<compile_context>
chip_gen: v5e
topology: v5e:2x2
jax: 0.10.0
libtpu: 0.0.40
codegen_flags: <defaults>
</compile_context>

<pallas_src>
import functools

import jax
import jax.numpy as jnp
from jax import lax
from jax.experimental import pallas as pl
from jax.experimental.pallas import tpu as pltpu

_MIB = 1024 * 1024


def _tpu_flavor():
    """Best-effort chip probe -> (is_v7, vmem_capacity_bytes)."""
    kind = ""
    try:
        kind = jax.devices()[0].device_kind.lower()
    except Exception:
        pass
    is_v7 = ("v7" in kind) or ("7x" in kind)
    vmem_cap = 64 * _MIB if is_v7 else 128 * _MIB
    try:
        cap = getattr(pltpu.get_tpu_info(), "vmem_capacity_bytes", None)
        if cap:
            vmem_cap = int(cap)
    except Exception:
        pass
    return is_v7, vmem_cap


def _info_nce_kernel(*refs, inv_temperature, n_valid_rows, pack, compute_f32):
    if pack > 1:
        seg_ref, u_ref, p_ref, n_ref, out_ref = refs
    else:
        u_ref, p_ref, n_ref, out_ref = refs

    i = pl.program_id(0)
    tb = u_ref.shape[0]

    u = u_ref[...]
    p = p_ref[...]
    n = n_ref[...]
    if compute_f32:
        # bf16 stays on the HBM wire; upcast after load (v5e/v6e / non-bf16 path)
        u = u.astype(jnp.float32)
        p = p.astype(jnp.float32)
        n = n.astype(jnp.float32)

    if pack > 1:
        # constant [pack*D, pack] 0/1 segment matrix, resident in VMEM
        seg = seg_ref[...]

    def rowsum(x):
        # per-original-row reduction with f32 accumulation
        if pack == 1:
            return jnp.sum(x, axis=-1, keepdims=True, dtype=jnp.float32)
        return jnp.dot(x, seg, preferred_element_type=jnp.float32)

    # one large product live at a time (keeps VMEM pressure low)
    uu_s = rowsum(u * u)
    pp_s = rowsum(p * p)
    nn_s = rowsum(n * n)
    up_s = rowsum(u * p)
    un_s = rowsum(u * n)

    # torch.cosine_similarity semantics: denom = sqrt(max(||u||^2 * ||x||^2, eps^2))
    eps2 = jnp.float32(1e-8) * jnp.float32(1e-8)
    pos_sim = up_s * lax.rsqrt(jnp.maximum(uu_s * pp_s, eps2))
    neg_sim = un_s * lax.rsqrt(jnp.maximum(uu_s * nn_s, eps2))

    # cross_entropy([pos, neg]/T, label=0) == softplus((neg - pos)/T), stable form
    x = (neg_sim - pos_sim) * jnp.float32(inv_temperature)
    per_row = jnp.maximum(x, jnp.float32(0.0)) + jnp.log1p(jnp.exp(-jnp.abs(x)))

    # mask padded rows of a partial last tile
    row = i * tb + lax.broadcasted_iota(jnp.int32, per_row.shape, 0)
    per_row = jnp.where(row < n_valid_rows, per_row, jnp.float32(0.0))

    # per-tile partial sum -> independent (8,128) output block (parallel-safe)
    tile_sum = jnp.sum(per_row)
    r = lax.broadcasted_iota(jnp.int32, (8, 128), 0)
    c = lax.broadcasted_iota(jnp.int32, (8, 128), 1)
    out_ref[...] = jnp.where((r == 0) & (c == 0), tile_sum, jnp.float32(0.0))


def info_nce_loss(user_embedding, pos_item_embedding, neg_item_embedding,
                  temperature=0.2, block_rows=None):
    B, D = user_embedding.shape
    assert pos_item_embedding.shape == (B, D)
    assert neg_item_embedding.shape == (B, D)

    is_v7, vmem_cap = _tpu_flavor()

    # lane-dense repack when D < 128: [B, D] -> [B/pack, pack*D] (pack*D == 128)
    pack = 1
    if D < 128 and 128 % D == 0 and B % (128 // D) == 0:
        pack = 128 // D
    dp = pack * D
    rows = B // pack
    u = user_embedding.reshape(rows, dp)
    p = pos_item_embedding.reshape(rows, dp)
    n = neg_item_embedding.reshape(rows, dp)

    itemsize = jnp.dtype(u.dtype).itemsize
    # bf16 multiplies stay bf16 only on v7x (vld-slot pressure); else upcast to f32
    compute_f32 = not (u.dtype == jnp.bfloat16 and is_v7)
    compute_dtype = jnp.float32 if compute_f32 else u.dtype

    # generation-aware scoped-VMEM limit + tile budget
    vmem_limit = min(vmem_cap - 16 * _MIB, 48 * _MIB if is_v7 else 64 * _MIB)
    vmem_limit = max(vmem_limit, 16 * _MIB)
    if block_rows is None:
        budget = int(vmem_limit * 0.7)
        # 3 inputs x 2 pipeline buffers + ~4 f32 (tb, dp) temporaries (casts/product)
        bytes_per_row = 3 * 2 * dp * itemsize + 4 * dp * 4
        tb = budget // bytes_per_row
        cap = 1024 if is_v7 else (4096 if dp <= 512 else 2048)
        tb = max(8, min(cap, (tb // 8) * 8))
    else:
        tb = int(block_rows)
    if tb >= rows:
        tb = rows  # single tile; full first dim is always a legal block shape
    grid_rows = pl.cdiv(rows, tb)

    kernel = functools.partial(
        _info_nce_kernel,
        inv_temperature=1.0 / float(temperature),
        n_valid_rows=rows, pack=pack, compute_f32=compute_f32)

    in_specs = []
    args = []
    if pack > 1:
        lane = jnp.arange(dp, dtype=jnp.int32)[:, None]
        col = jnp.arange(pack, dtype=jnp.int32)[None, :]
        seg = (lane // D == col).astype(compute_dtype)
        in_specs.append(pl.BlockSpec((dp, pack), lambda i: (0, 0)))
        args.append(seg)
    in_specs += [
        pl.BlockSpec((tb, dp), lambda i: (i, 0)),
        pl.BlockSpec((tb, dp), lambda i: (i, 0)),
        pl.BlockSpec((tb, dp), lambda i: (i, 0)),
    ]
    args += [u, p, n]

    partials = pl.pallas_call(
        kernel,
        out_shape=jax.ShapeDtypeStruct((grid_rows * 8, 128), jnp.float32),
        grid=(grid_rows,),
        in_specs=in_specs,
        out_specs=pl.BlockSpec((8, 128), lambda i: (i, 0)),
        compiler_params=pltpu.CompilerParams(
            dimension_semantics=("parallel",),
            vmem_limit_bytes=int(vmem_limit)),
    )(*args)

    # tiny cross-tile reduction + mean over the true batch, outside the kernel
    return jnp.sum(partials) * jnp.float32(1.0 / B)


if __name__ == "__main__":
    def ref(u, p, n, t=0.2, eps=1e-8):
        # matches F.cosine_similarity (product-of-squared-norms clamp) + CE(label=0)
        u = u.astype(jnp.float32); p = p.astype(jnp.float32); n = n.astype(jnp.float32)
        w1 = jnp.sum(u * u, axis=-1)
        pos = jnp.sum(u * p, axis=-1) / jnp.sqrt(
            jnp.maximum(w1 * jnp.sum(p * p, axis=-1), eps * eps))
        neg = jnp.sum(u * n, axis=-1) / jnp.sqrt(
            jnp.maximum(w1 * jnp.sum(n * n, axis=-1), eps * eps))
        logits = jnp.stack([pos, neg], axis=1) / t
        lse = jax.nn.logsumexp(logits, axis=1)
        return jnp.mean(lse - logits[:, 0])

    root = jax.random.PRNGKey(0)

    # small shapes consistent with the module (D < 128 exercises lane-dense packing)
    k_u, k_p, k_n = jax.random.split(jax.random.fold_in(root, 0), 3)
    B, D = 8, 32
    user = jax.random.normal(k_u, (B, D), dtype=jnp.float32)
    pos = jax.random.normal(k_p, (B, D), dtype=jnp.float32)
    neg = jax.random.normal(k_n, (B, D), dtype=jnp.float32)
    loss = info_nce_loss(user, pos, neg, temperature=0.2)
    jax.block_until_ready(loss)
    assert jnp.allclose(loss, ref(user, pos, neg), atol=1e-5, rtol=1e-5), \
        (loss, ref(user, pos, neg))

    # larger case exercising multi-tile partial outputs + partial-tile masking
    k_u2, k_p2, k_n2 = jax.random.split(jax.random.fold_in(root, 1), 3)
    B2, D2 = 200, 128
    user2 = jax.random.normal(k_u2, (B2, D2), dtype=jnp.float32)
    pos2 = jax.random.normal(k_p2, (B2, D2), dtype=jnp.float32)
    neg2 = jax.random.normal(k_n2, (B2, D2), dtype=jnp.float32)
    loss2 = info_nce_loss(user2, pos2, neg2, temperature=0.2, block_rows=64)
    jax.block_until_ready(loss2)
    assert jnp.allclose(loss2, ref(user2, pos2, neg2), atol=1e-5, rtol=1e-5), \
        (loss2, ref(user2, pos2, neg2))

    # bf16 path (streamed bf16; f32 upcast on v5e/v6e, bf16 compute on v7x)
    k_u3, k_p3, k_n3 = jax.random.split(jax.random.fold_in(root, 2), 3)
    B3, D3 = 64, 64
    user3 = jax.random.normal(k_u3, (B3, D3), dtype=jnp.bfloat16)
    pos3 = jax.random.normal(k_p3, (B3, D3), dtype=jnp.bfloat16)
    neg3 = jax.random.normal(k_n3, (B3, D3), dtype=jnp.bfloat16)
    loss3 = info_nce_loss(user3, pos3, neg3, temperature=0.2)
    jax.block_until_ready(loss3)
    assert jnp.allclose(loss3, ref(user3, pos3, neg3), atol=6e-2, rtol=6e-2), \
        (loss3, ref(user3, pos3, neg3))

    print("KERNEL_OK")
</pallas_src>

<mosaic_0001>
module attributes {stable_mosaic.version = 11 : i64} {
  func.func @_info_nce_kernel(%arg0: i32, %arg1: memref<128x4xf32, #tpu.memory_space<vmem>>, %arg2: memref<2x128xf32, #tpu.memory_space<vmem>>, %arg3: memref<2x128xf32, #tpu.memory_space<vmem>>, %arg4: memref<2x128xf32, #tpu.memory_space<vmem>>, %arg5: memref<8x128xf32, #tpu.memory_space<vmem>>) attributes {dimension_semantics = [#tpu.dimension_semantics<parallel>], iteration_bounds = array<i64: 1>, scalar_prefetch = 0 : i64, scratch_operands = 0 : i64, tpu.core_type = #tpu.core_type<tc>, window_params = [{pipeline_mode = #tpu.pipeline_mode<synchronous>, transform_indices = @transform_0, window_bounds = array<i64: 128, 4>}, {transform_indices = @transform_1, window_bounds = array<i64: 2, 128>}, {transform_indices = @transform_2, window_bounds = array<i64: 2, 128>}, {transform_indices = @transform_3, window_bounds = array<i64: 2, 128>}, {transform_indices = @transform_4, window_bounds = array<i64: 8, 128>}]} {
    %c0 = arith.constant 0 : index
    %c0_0 = arith.constant 0 : index
    %0 = vector.load %arg2[%c0, %c0_0] : memref<2x128xf32, #tpu.memory_space<vmem>>, vector<2x128xf32>
    %c0_1 = arith.constant 0 : index
    %c0_2 = arith.constant 0 : index
    %1 = vector.load %arg3[%c0_1, %c0_2] : memref<2x128xf32, #tpu.memory_space<vmem>>, vector<2x128xf32>
    %c0_3 = arith.constant 0 : index
    %c0_4 = arith.constant 0 : index
    %2 = vector.load %arg4[%c0_3, %c0_4] : memref<2x128xf32, #tpu.memory_space<vmem>>, vector<2x128xf32>
    %c0_5 = arith.constant 0 : index
    %c0_6 = arith.constant 0 : index
    %3 = vector.load %arg1[%c0_5, %c0_6] : memref<128x4xf32, #tpu.memory_space<vmem>>, vector<128x4xf32>
    %4 = arith.mulf %0, %0 : vector<2x128xf32>
    %cst = arith.constant dense<0.000000e+00> : vector<2x4xf32>
    %5 = tpu.matmul %4, %3, %cst {dimension_numbers = #tpu.dot_dimension_numbers<[1], [0], [0], [1], [0, 0, 1, 1], [], []>} : vector<2x128xf32>, vector<128x4xf32>, vector<2x4xf32> -> vector<2x4xf32>
    %6 = arith.mulf %1, %1 : vector<2x128xf32>
    %cst_7 = arith.constant dense<0.000000e+00> : vector<2x4xf32>
    %7 = tpu.matmul %6, %3, %cst_7 {dimension_numbers = #tpu.dot_dimension_numbers<[1], [0], [0], [1], [0, 0, 1, 1], [], []>} : vector<2x128xf32>, vector<128x4xf32>, vector<2x4xf32> -> vector<2x4xf32>
    %8 = arith.mulf %2, %2 : vector<2x128xf32>
    %cst_8 = arith.constant dense<0.000000e+00> : vector<2x4xf32>
    %9 = tpu.matmul %8, %3, %cst_8 {dimension_numbers = #tpu.dot_dimension_numbers<[1], [0], [0], [1], [0, 0, 1, 1], [], []>} : vector<2x128xf32>, vector<128x4xf32>, vector<2x4xf32> -> vector<2x4xf32>
    %10 = arith.mulf %0, %1 : vector<2x128xf32>
    %cst_9 = arith.constant dense<0.000000e+00> : vector<2x4xf32>
    %11 = tpu.matmul %10, %3, %cst_9 {dimension_numbers = #tpu.dot_dimension_numbers<[1], [0], [0], [1], [0, 0, 1, 1], [], []>} : vector<2x128xf32>, vector<128x4xf32>, vector<2x4xf32> -> vector<2x4xf32>
    %12 = arith.mulf %0, %2 : vector<2x128xf32>
    %cst_10 = arith.constant dense<0.000000e+00> : vector<2x4xf32>
    %13 = tpu.matmul %12, %3, %cst_10 {dimension_numbers = #tpu.dot_dimension_numbers<[1], [0], [0], [1], [0, 0, 1, 1], [], []>} : vector<2x128xf32>, vector<128x4xf32>, vector<2x4xf32> -> vector<2x4xf32>
    %cst_11 = arith.constant 9.99999993E-9 : f32
    %cst_12 = arith.constant 9.99999993E-9 : f32
    %14 = arith.mulf %cst_11, %cst_12 : f32
    %15 = arith.mulf %5, %7 : vector<2x4xf32>
    %16 = vector.broadcast %14 : f32 to vector<2x4xf32>
    %17 = arith.maximumf %15, %16 : vector<2x4xf32>
    %18 = math.rsqrt %17 : vector<2x4xf32>
    %19 = arith.mulf %11, %18 : vector<2x4xf32>
    %20 = arith.mulf %5, %9 : vector<2x4xf32>
    %21 = vector.broadcast %14 : f32 to vector<2x4xf32>
    %22 = arith.maximumf %20, %21 : vector<2x4xf32>
    %23 = math.rsqrt %22 : vector<2x4xf32>
    %24 = arith.mulf %13, %23 : vector<2x4xf32>
    %25 = arith.subf %24, %19 : vector<2x4xf32>
    %cst_13 = arith.constant 5.000000e+00 : f32
    %26 = vector.broadcast %cst_13 : f32 to vector<2x4xf32>
    %27 = arith.mulf %25, %26 : vector<2x4xf32>
    %cst_14 = arith.constant 0.000000e+00 : f32
    %28 = vector.broadcast %cst_14 : f32 to vector<2x4xf32>
    %29 = arith.maximumf %27, %28 : vector<2x4xf32>
    %30 = math.absf %27 : vector<2x4xf32>
    %cst_15 = arith.constant 0.000000e+00 : f32
    %31 = vector.broadcast %cst_15 : f32 to vector<2x4xf32>
    %32 = arith.subf %31, %30 : vector<2x4xf32>
    %33 = math.exp %32 : vector<2x4xf32>
    %34 = math.log1p %33 : vector<2x4xf32>
    %35 = arith.addf %29, %34 : vector<2x4xf32>
    %c2_i32 = arith.constant 2 : i32
    %36 = arith.muli %arg0, %c2_i32 : i32
    %37 = tpu.iota {dimensions = array<i32: 0>} : vector<2x4xi32>
    %38 = vector.broadcast %36 : i32 to vector<2x4xi32>
    %39 = arith.addi %38, %37 : vector<2x4xi32>
    %c2_i32_16 = arith.constant 2 : i32
    %40 = vector.broadcast %c2_i32_16 : i32 to vector<2x4xi32>
    %41 = arith.cmpi slt, %39, %40 : vector<2x4xi32>
    %cst_17 = arith.constant 0.000000e+00 : f32
    %42 = vector.broadcast %cst_17 : f32 to vector<2x4xf32>
    %43 = arith.select %41, %35, %42 : vector<2x4xi1>, vector<2x4xf32>
    %44 = vector.shape_cast %43 : vector<2x4xf32> to vector<1x2x4xf32>
    %cst_18 = arith.constant dense<0.000000e+00> : vector<1xf32>
    %45 = vector.multi_reduction <add>, %44, %cst_18 [1, 2] : vector<1x2x4xf32> to vector<1xf32>
    %46 = vector.shape_cast %45 : vector<1xf32> to vector<1x1x1xf32>
    %47 = vector.extract %46[0, 0, 0] : f32 from vector<1x1x1xf32>
    %48 = tpu.iota {dimensions = array<i32: 0>} : vector<8x128xi32>
    %49 = tpu.iota {dimensions = array<i32: 1>} : vector<8x128xi32>
    %c0_i32 = arith.constant 0 : i32
    %50 = vector.broadcast %c0_i32 : i32 to vector<8x128xi32>
    %51 = arith.cmpi eq, %48, %50 : vector<8x128xi32>
    %c0_i32_19 = arith.constant 0 : i32
    %52 = vector.broadcast %c0_i32_19 : i32 to vector<8x128xi32>
    %53 = arith.cmpi eq, %49, %52 : vector<8x128xi32>
    %54 = arith.andi %51, %53 : vector<8x128xi1>
    %cst_20 = arith.constant 0.000000e+00 : f32
    %55 = vector.broadcast %47 : f32 to vector<8x128xf32>
    %56 = vector.broadcast %cst_20 : f32 to vector<8x128xf32>
    %57 = arith.select %54, %55, %56 : vector<8x128xi1>, vector<8x128xf32>
    %c0_21 = arith.constant 0 : index
    %c0_22 = arith.constant 0 : index
    %58 = vector.load %arg5[%c0_21, %c0_22] : memref<8x128xf32, #tpu.memory_space<vmem>>, vector<8x128xf32>
    tpu.vector_store %arg5[%c0_21, %c0_22], %57 {strides = array<i32>} : memref<8x128xf32, #tpu.memory_space<vmem>>, vector<8x128xf32>,
    return
  }
  func.func @transform_0(%arg0: i32) -> (i32, i32) {
    %c0_i32 = arith.constant 0 : i32
    %c0_i32_0 = arith.constant 0 : i32
    %c0_i32_1 = arith.constant 0 : i32
    return %c0_i32, %c0_i32_0 : i32, i32
  }
  func.func @transform_1(%arg0: i32) -> (i32, i32) {
    %c0_i32 = arith.constant 0 : i32
    %c0_i32_0 = arith.constant 0 : i32
    return %arg0, %c0_i32 : i32, i32
  }
  func.func @transform_2(%arg0: i32) -> (i32, i32) {
    %c0_i32 = arith.constant 0 : i32
    %c0_i32_0 = arith.constant 0 : i32
    return %arg0, %c0_i32 : i32, i32
  }
  func.func @transform_3(%arg0: i32) -> (i32, i32) {
    %c0_i32 = arith.constant 0 : i32
    %c0_i32_0 = arith.constant 0 : i32
    return %arg0, %c0_i32 : i32, i32
  }
  func.func @transform_4(%arg0: i32) -> (i32, i32) {
    %c0_i32 = arith.constant 0 : i32
    %c0_i32_0 = arith.constant 0 : i32
    return %arg0, %c0_i32 : i32, i32
  }
}

</mosaic_0001>

<bundles_post_ra>
// kernel: tpu_custom_call.1
= control target key start
LH: loop header
LB: loop body
LE: loop exit
PB: predicated region body
PF: predicated region fallthrough
CT: control target
= control target key end

     0   :  { %s413_s0 = inlined_call_operand.vmem [shape: f32[128,4], index: 0, kind: input, shape index: {}]   ;;  %s414_s1 = inlined_call_operand.vmem [shape: f32[2,128], index: 1, kind: input, shape index: {}]   ;;  %s415_s2 = inlined_call_operand.vmem [shape: f32[2,128], index: 2, kind: input, shape index: {}]   ;;  %s416_s3 = inlined_call_operand.vmem [shape: f32[2,128], index: 3, kind: input, shape index: {}]   ;;  %s417_s4 = inlined_call_operand.hbm [shape: f32[8,128], index: 4, kind: output, shape index: {}]  }
   0x1   :  { %v293_v0 = vld [vmem:[%s413_s0 + $0x78] sm:$0xff]  ;;  %v298_v1 = vld [vmem:[%s413_s0 + $0x70] sm:$0xff]  ;;  %v306_v2 = vld [vmem:[%s413_s0 + $0x68] sm:$0xff] }
   0x2   :  { %38 = vmatpush.msra.mxu0 %v293_v0  ;;  %59 = vmatpush.msra.mxu1 %v293_v0  ;;  %v315_v3 = vld [vmem:[%s413_s0 + $0x60] sm:$0xff]  ;;  %v324_v4 = vld [vmem:[%s413_s0 + $0x58] sm:$0xff] }
   0x3   :  { %80 = vmatpush.msra.mxu2 %v293_v0  ;;  %101 = vmatpush.msra.mxu3 %v293_v0 }
   0x4   :  { %39 = vmatpush.msra.mxu0 %v298_v1  ;;  %60 = vmatpush.msra.mxu1 %v298_v1 }
   0x5   :  { %81 = vmatpush.msra.mxu2 %v298_v1  ;;  %102 = vmatpush.msra.mxu3 %v298_v1 }
   0x6   :  { %40 = vmatpush.msra.mxu0 %v306_v2  ;;  %61 = vmatpush.msra.mxu1 %v306_v2 }
   0x7   :  { %82 = vmatpush.msra.mxu2 %v306_v2  ;;  %103 = vmatpush.msra.mxu3 %v306_v2 }
   0x8   :  { %9 = vsyncpa [#allocation3], 0  ;;  %41 = vmatpush.msra.mxu0 %v315_v3  ;;  %62 = vmatpush.msra.mxu1 %v315_v3  ;;  %v333_v5 = vld [vmem:[%s413_s0 + $0x50] sm:$0xff]  ;;  %v342_v6 = vld [vmem:[%s413_s0 + $0x48] sm:$0xff]  ;;  %v186_v57 = vlaneseq  ;;  %vm192_vm8 = vcmask 25600   ;;  %s218_s27 = sshll.u32 %s417_s4, 4  ;;  %s219_s27 = int_to_ptr.hbm [resolvable:$true] %s218_s27 }
   0x9   :  { %83 = vmatpush.msra.mxu2 %v315_v3  ;;  %104 = vmatpush.msra.mxu3 %v315_v3  ;;  %v351_v7 = vld [vmem:[%s413_s0 + $0x40] sm:$0xff]  ;;  %v360_v8 = vld [vmem:[%s413_s0 + $0x38] sm:$0xff]  ;;  %v27_v9 = vld [vmem:[%s413_s0 + $0x30] sm:$0xff] }
   0xa   :  { %42 = vmatpush.msra.mxu0 %v324_v4  ;;  %63 = vmatpush.msra.mxu1 %v324_v4  ;;  %v26_v10 = vld [vmem:[%s413_s0 + $0x28] sm:$0xff]  ;;  %v25_v11 = vld [vmem:[%s413_s0 + $0x20] sm:$0xff]  ;;  %v24_v12 = vld [vmem:[%s413_s0 + $0x18] sm:$0xff]  ;;  %v187_v60 = vshrl.u32 %v186_v57, 7 }
   0xb   :  { %84 = vmatpush.msra.mxu2 %v324_v4  ;;  %105 = vmatpush.msra.mxu3 %v324_v4  ;;  %v23_v13 = vld [vmem:[%s413_s0 + $0x10] sm:$0xff]  ;;  %v18_v14 = vld [vmem:[%s414_s1] sm:$0x3]  ;;  %v22_v15 = vld [vmem:[%s413_s0 + $0x8] sm:$0xff] }
   0xc   :  { %43 = vmatpush.msra.mxu0 %v333_v5  ;;  %64 = vmatpush.msra.mxu1 %v333_v5  ;;  %v19_v16 = vld [vmem:[%s415_s2] sm:$0x3]  ;;  %v37_v19 = vmul.f32 %v18_v14, %v18_v14  ;;  %vm190_vm7 = vcmp.lt.s32.totalorder %v187_v60, 2  ;;  %vm205_vm9 = vcmp.eq.s32.totalorder %v187_v60, 0 }
   0xd   :  { %85 = vmatpush.msra.mxu2 %v333_v5  ;;  %106 = vmatpush.msra.mxu3 %v333_v5  ;;  %v20_v17 = vld [vmem:[%s416_s3] sm:$0x3]  ;;  %v58_v20 = vmul.f32 %v19_v16, %v19_v16  ;;  %v100_v22 = vmul.f32 %v19_v16, %v18_v14 }
   0xe   :  { %44 = vmatpush.msra.mxu0 %v342_v6  ;;  %65 = vmatpush.msra.mxu1 %v342_v6  ;;  %v21_v18 = vld [vmem:[%s413_s0] sm:$0xff]  ;;  %v79_v21 = vmul.f32 %v20_v17, %v20_v17  ;;  %v121_v23 = vmul.f32 %v20_v17, %v18_v14  ;;  %s264_s0 = smov [#allocation2]  }
   0xf   :  { %86 = vmatpush.msra.mxu2 %v342_v6  ;;  %107 = vmatpush.msra.mxu3 %v342_v6  ;;  %s216_s1 = sshll.u32 %s264_s0, 4  ;;  %s217_s1 = int_to_ptr.vmem [resolvable:$true] %s216_s1 }
  0x10   :  { %45 = vmatpush.msra.mxu0 %v351_v7  ;;  %66 = vmatpush.msra.mxu1 %v351_v7 }
  0x11   :  { %87 = vmatpush.msra.mxu2 %v351_v7  ;;  %108 = vmatpush.msra.mxu3 %v351_v7 }
  0x12   :  { %46 = vmatpush.msra.mxu0 %v360_v8  ;;  %67 = vmatpush.msra.mxu1 %v360_v8 }
  0x13   :  { %88 = vmatpush.msra.mxu2 %v360_v8  ;;  %109 = vmatpush.msra.mxu3 %v360_v8 }
  0x14   :  { %47 = vmatpush.msra.mxu0 %v27_v9  ;;  %68 = vmatpush.msra.mxu1 %v27_v9 }
  0x15   :  { %89 = vmatpush.msra.mxu2 %v27_v9  ;;  %110 = vmatpush.msra.mxu3 %v27_v9 }
  0x16   :  { %48 = vmatpush.msra.mxu0 %v26_v10  ;;  %69 = vmatpush.msra.mxu1 %v26_v10 }
  0x17   :  { %90 = vmatpush.msra.mxu2 %v26_v10  ;;  %111 = vmatpush.msra.mxu3 %v26_v10 }
  0x18   :  { %49 = vmatpush.msra.mxu0 %v25_v11  ;;  %70 = vmatpush.msra.mxu1 %v25_v11 }
  0x19   :  { %91 = vmatpush.msra.mxu2 %v25_v11  ;;  %112 = vmatpush.msra.mxu3 %v25_v11 }
  0x1a   :  { %50 = vmatpush.msra.mxu0 %v24_v12  ;;  %71 = vmatpush.msra.mxu1 %v24_v12 }
  0x1b   :  { %92 = vmatpush.msra.mxu2 %v24_v12  ;;  %113 = vmatpush.msra.mxu3 %v24_v12 }
  0x1c   :  { %51 = vmatpush.msra.mxu0 %v23_v13  ;;  %72 = vmatpush.msra.mxu1 %v23_v13 }
  0x1d   :  { %93 = vmatpush.msra.mxu2 %v23_v13  ;;  %114 = vmatpush.msra.mxu3 %v23_v13 }
  0x1e   :  { %52 = vmatpush.msra.mxu0 %v22_v15  ;;  %73 = vmatpush.msra.mxu1 %v22_v15 }
  0x1f   :  { %94 = vmatpush.msra.mxu2 %v22_v15  ;;  %115 = vmatpush.msra.mxu3 %v22_v15 }
  0x20   :  { %53 = vmatpush.msra.mxu0 %v21_v18  ;;  %74 = vmatpush.msra.mxu1 %v21_v18 }
  0x21   :  { %95 = vmatpush.msra.mxu2 %v21_v18  ;;  %54 = vmatmul.f32.vlgmr.msra.gmra.mxu0 %v37_v19 }
  0x22   :  { %75 = vmatmul.f32.vlgmr.msra.gmra.mxu1 %v58_v20  ;;  %96 = vmatmul.f32.vlgmr.msra.gmra.mxu2 %v79_v21 }
  0x23   :  { %122 = vmatpush.msrb.mxu0 %v293_v0  ;;  %116 = vmatpush.msra.mxu3 %v21_v18 }
  0x24   :  { %117 = vmatmul.f32.vlgmr.msra.gmra.mxu3 %v100_v22 }
  0x25   :  { %123 = vmatpush.msrb.mxu0 %v298_v1 }
  0x27   :  { %124 = vmatpush.msrb.mxu0 %v306_v2 }
  0x29   :  { %125 = vmatpush.msrb.mxu0 %v315_v3 }
  0x2b   :  { %126 = vmatpush.msrb.mxu0 %v324_v4 }
  0x2d   :  { %127 = vmatpush.msrb.mxu0 %v333_v5 }
  0x2f   :  { %128 = vmatpush.msrb.mxu0 %v342_v6 }
  0x31   :  { %129 = vmatpush.msrb.mxu0 %v351_v7 }
  0x33   :  { %130 = vmatpush.msrb.mxu0 %v360_v8 }
  0x35   :  { %131 = vmatpush.msrb.mxu0 %v27_v9 }
  0x37   :  { %132 = vmatpush.msrb.mxu0 %v26_v10 }
  0x39   :  { %133 = vmatpush.msrb.mxu0 %v25_v11 }
  0x3b   :  { %134 = vmatpush.msrb.mxu0 %v24_v12  ;;  %v204_v12 = vand.u32 127, %v186_v57 }
  0x3d   :  { %135 = vmatpush.msrb.mxu0 %v23_v13  ;;  %vm206_vm10 = vcmp.eq.s32.totalorder %v204_v12, 0 }
  0x3e   :  { %vm207_vm11 = vmand %vm205_vm9, %vm206_vm10 }
  0x3f   :  { %136 = vmatpush.msrb.mxu0 %v22_v15 }
  0x41   :  { %137 = vmatpush.msrb.mxu0 %v21_v18 }
  0x42   :  { %138 = vmatmul.f32.vlgmr.msrb.gmra.mxu0 %v121_v23 }
  0x9e   :  { %v55_v24 = vpop.f32.mrf.mxu0 }
  0x9f   :  { %v76_v25 = vpop.f32.mrf.mxu1 }
  0xa0   :  { %v142_v26 = vmul.f32 %v76_v25, %v55_v24 }
  0xa2   :  { %v143_v27 = vmax.f32 %v142_v26, 1e-16 }
  0xa4   :  { %230 = vrsqrt.f32 %v143_v27  ;;  %vm150_vm0 = vweird.f32 %v143_v27 }
  0xa5   :  { %v97_v28 = vpop.f32.mrf.mxu2 }
  0xa6   :  { %v155_v29 = vmul.f32 %v97_v28, %v55_v24 }
  0xa7   :  { %v118_v43 = vpop.f32.mrf.mxu3 }
  0xa8   :  { %v156_v30 = vmax.f32 %v155_v29, 1e-16 }
  0xaa   :  { %v231_v31 = vpop.eup %230  ;;  %232 = vrsqrt.f32 %v156_v30  ;;  %vm163_vm4 = vweird.f32 %v156_v30 }
  0xab   :  { %v145_v32 = vmul.f32 %v231_v31, %v143_v27  ;;  %vm151_vm1 = vweird.f32 %v231_v31 }
  0xac   :  { %vm152_vm3 = vmor %vm150_vm0, %vm151_vm1 }
  0xad   :  { %v146_v33 = vmul.f32 %v231_v31, %v145_v32 }
  0xaf   :  { %v147_v35 = vmul.f32 0.5, %v146_v33 }
  0xb0   :  { %v233_v34 = vpop.eup %232 }
  0xb1   :  { %v158_v36 = vmul.f32 %v233_v34, %v156_v30  ;;  %v148_v39 = vsub.f32 1.5, %v147_v35  ;;  %vm164_vm2 = vweird.f32 %v233_v34 }
  0xb2   :  { %vm165_vm5 = vmor %vm163_vm4, %vm164_vm2 }
  0xb3   :  { %v159_v37 = vmul.f32 %v233_v34, %v158_v36  ;;  %v149_v41 = vmul.f32 %v231_v31, %v148_v39 }
  0xb5   :  { %v160_v38 = vmul.f32 0.5, %v159_v37  ;;  %v153_v44 = vsel %vm152_vm3, %v231_v31, %v149_v41 }
  0xb6   :  { %v154_v47 = vmul.f32 %v153_v44, %v118_v43 }
  0xb7   :  { %v161_v40 = vsub.f32 1.5, %v160_v38 }
  0xb9   :  { %v162_v42 = vmul.f32 %v233_v34, %v161_v40 }
  0xbb   :  { %v166_v46 = vsel %vm165_vm5, %v233_v34, %v162_v42 }
  0xbf   :  { %v139_v45 = vpop.f32.mrf.mxu0 }
  0xc0   :  { %v167_v48 = vmul.f32 %v166_v46, %v139_v45 }
  0xc2   :  { %v168_v49 = vsub.f32 %v167_v48, %v154_v47 }
  0xc4   :  { %v169_v50 = vmul.f32 5.0, %v168_v49 }
  0xc6   :  { %v171_v51 = vand.u32 2147483647, %v169_v50  ;;  %v170_v0 = vmax.f32 %v169_v50, 0.0 }
  0xc8   :  { %v172_v52 = vsub.f32 0.0, %v171_v51 }
  0xca   :  { %v173_v53 = vmul.f32 1.442695, %v172_v52 }
  0xcc   :  { %234 = vpow2.f32 %v173_v53 }
  0xd2   :  { %v235_v54 = vpop.eup %234 }
  0xd3   :  { %v175_v55 = vadd.f32 1.0, %v235_v54  ;;  %v178_v56 = vmul.f32 -0.5, %v235_v54  ;;  %v181_v59 = vand.u32 2147483647, %v235_v54 }
  0xd5   :  { %236 = vlog2.f32 %v175_v55  ;;  %v179_v58 = vadd.f32 1.0, %v178_v56  ;;  %vm182_vm6 = vcmp.lt.f32.partialorder %v181_v59, 0.0004427343 }
  0xd7   :  { %v180_v63 = vmul.f32 %v235_v54, %v179_v58 }
  0xdb   :  { %v237_v61 = vpop.eup %236 }
  0xdc   :  { %v177_v62 = vmul.f32 0.6931472, %v237_v61 }
  0xde   :  { %v183_v1 = vsel %vm182_vm6, %v180_v63, %v177_v62 }
  0xdf   :  { %v184_v2 = vadd.f32 %v183_v1, %v170_v0 }
  0xe1   :  { %v191_v3 = vsel %vm190_vm7, %v184_v2, 0.0 }
  0xe2   :  { %v193_v4 = vsel %vm192_vm8, %v191_v3, 0.0 }
  0xe3   :  { %194 = vadd.xlane.f32.xlu0 %v193_v4 }
 0x156   :  { %v195_v5 = vpop.xlane.xlu0 %194 }
 0x157   :  { %v196_v6 = vrot.slane %v195_v5, 4 }
 0x159   :  { %v197_v7 = vadd.f32 %v196_v6, %v195_v5 }
 0x15b   :  { %v198_v8 = vrot.slane %v197_v7, 2 }
 0x15d   :  { %v199_v9 = vadd.f32 %v198_v8, %v197_v7 }
 0x15f   :  { %v200_v10 = vrot.slane %v199_v9, 1 }
 0x161   :  { %v201_v11 = vadd.f32 %v200_v10, %v199_v9 }
 0x163   :  { %227 = vpush %v201_v11 }
 0x194   :  { %s228_s28 = spop %227 }
 0x195   :  { %v208_v13 = vstv %s228_s28 }
 0x196   :  { %v209_v14 = vsel %vm207_vm11, %v208_v13, 0.0 }
 0x197   :  { %210 = vst [vmem:[#allocation2] sm:$0xff] %v209_v14 }
 0x198   :  { %221 = dma.vmem_to_hbm [thread:$0]  %s217_s1, 128, %s219_s27, [#allocation3]  }
 0x199   :  { %262 = dma.done.wait [#allocation3], 128  }
 0x19a   :  { %263 = vsyncadd [#allocation3], 4294967168 }
 0x19b   :  { %226 = vsyncpa [#allocation3], 1 }

</bundles_post_ra>
